<compile_context>
chip_gen: v7x
topology: tpu7x:2x2x1
jax: 0.10.0
libtpu: 0.0.40
codegen_flags: <defaults>
</compile_context>

<pallas_src>
import functools

import jax
import jax.numpy as jnp
from jax import lax
from jax.experimental import pallas as pl
from jax.experimental.pallas import tpu as pltpu


def _corr_block_kernel(x_ref, o_ref, *, block_batch, use_bf16):
    # x_ref: (bb, T, N) observations-by-variables slabs (bf16 or f32).
    # o_ref: (bb, N, N) |corrcoef| tiles, diag forced to 1, NaN scrubbed to 0.
    n = x_ref.shape[-1]

    # Diagonal mask, built once per grid step (hoisted out of the batch loop).
    row = lax.broadcasted_iota(jnp.int32, (n, n), 0)
    col = lax.broadcasted_iota(jnp.int32, (n, n), 1)
    diag = row == col
    zero = jnp.float32(0.0)
    one = jnp.float32(1.0)

    def body(b, carry):
        xb = x_ref[b].astype(jnp.float32)                  # (T, N) f32

        # Center each variable (column) over the T observations (f32).
        mean = jnp.mean(xb, axis=0, keepdims=True)         # (1, N)
        xc = xb - mean                                     # (T, N)

        # Per-variable (unnormalized) variance from the centering pass — full
        # f32 precision, no N^2 diagonal mask / lane-reduce needed.
        d = jnp.sum(xc * xc, axis=0)                       # (N,)

        # MXU-native inputs: bf16 operands, f32 accumulation.  Contract the
        # observation axis of both operands directly (no transpose on the
        # MXU push path).
        xm = xc.astype(jnp.bfloat16) if use_bf16 else xc
        g = lax.dot_general(
            xm, xm,
            dimension_numbers=(((0,), (0,)), ((), ())),
            preferred_element_type=jnp.float32,
        )                                                  # (N, N) f32

        # N rsqrts (EUP) + two broadcast multiplies instead of N^2 sqrt+div.
        inv = lax.rsqrt(d)                                 # (N,)
        c = g * inv[:, None] * inv[None, :]                # (N, N)

        c = jnp.clip(c, -1.0, 1.0)                         # torch.corrcoef clamps
        c = jnp.where(diag, one, c)                        # fill_diagonal_(1)
        c = jnp.abs(c)                                     # torch.abs
        c = jnp.where(jnp.isnan(c), zero, c)               # S[isnan(S)] = 0

        o_ref[b] = c.astype(o_ref.dtype)
        return carry

    # Rolled loop (not a Python unroll): bounds live ranges so vreg pressure
    # stays constant regardless of block_batch.
    lax.fori_loop(0, block_batch, body, 0)


def _vmem_capacity_bytes(default=64 * 1024 * 1024):
    """Per-core VMEM capacity; conservative 64 MiB (v7x per-TC) fallback."""
    try:
        info = pltpu.get_tpu_info()
        cap = getattr(info, "vmem_capacity_bytes", None)
        if cap:
            return int(cap)
    except Exception:
        pass
    return default


def _pick_block_batch(B, T, N, in_bytes, out_bytes, vmem_cap):
    """Largest bb whose double-buffered in+out blocks fit ~1/3 of VMEM,
    while keeping >= ~4 grid steps when the batch allows (megacore + pipeline)."""
    per_elem = 2 * (T * N * in_bytes + N * N * out_bytes)   # double-buffered
    budget = max(per_elem, vmem_cap // 3)
    bb = max(1, budget // per_elem)
    if B >= 4:
        bb = min(bb, max(1, B // 4))
    return int(max(1, min(bb, B)))


def prior_correlation(x, *, use_bf16=True):
    """x: (B, T, N) float array -> (B, N*N) float32, matching priorCorrelation."""
    B, T, N = x.shape

    in_dtype = jnp.bfloat16 if use_bf16 else jnp.float32
    in_bytes = 2 if use_bf16 else 4
    x_in = x.astype(in_dtype)

    vmem_cap = _vmem_capacity_bytes()
    bb = _pick_block_batch(B, T, N, in_bytes, 4, vmem_cap)

    # Pad B to a multiple of bb (padded rows are all-zero -> diag 1 / off-diag 0
    # in the kernel, then sliced away) so awkward B never falls back to bb=1.
    B_pad = pl.cdiv(B, bb) * bb
    if B_pad != B:
        x_in = jnp.pad(x_in, ((0, B_pad - B), (0, 0), (0, 0)))

    kernel = functools.partial(
        _corr_block_kernel, block_batch=bb, use_bf16=use_bf16)

    # vmem_limit consistent with the chosen blocks: double-buffered in+out
    # plus headroom for compute temporaries / compiler-internal scratch.
    block_bytes = bb * (T * N * in_bytes + N * N * 4)
    vmem_limit = int(min(vmem_cap, max(2 * block_bytes + (8 << 20), 32 << 20)))

    out = pl.pallas_call(
        kernel,
        out_shape=jax.ShapeDtypeStruct((B_pad, N, N), jnp.float32),
        grid_spec=pltpu.PrefetchScalarGridSpec(
            num_scalar_prefetch=0,
            grid=(B_pad // bb,),
            in_specs=[pl.BlockSpec((bb, T, N), lambda b: (b, 0, 0))],
            out_specs=pl.BlockSpec((bb, N, N), lambda b: (b, 0, 0)),
        ),
        compiler_params=pltpu.CompilerParams(
            dimension_semantics=("parallel",),
            vmem_limit_bytes=vmem_limit,
        ),
    )(x_in)

    # Row-major (B, N, N) -> (B, N*N) is a free metadata reshape in XLA.
    return out[:B].reshape(B, N * N)


def _reference(x):
    # Pure-JAX reference (mirrors torch.corrcoef semantics).
    def one(xi):
        xc = xi - jnp.mean(xi, axis=0, keepdims=True)        # (T, N)
        g = xc.T @ xc
        d = jnp.sum(xc * xc, axis=0)
        c = g / jnp.sqrt(d[:, None] * d[None, :])
        c = jnp.clip(c, -1.0, 1.0)
        n = xi.shape[1]
        c = jnp.where(jnp.eye(n, dtype=bool), 1.0, c)
        c = jnp.abs(c)
        return jnp.where(jnp.isnan(c), 0.0, c).reshape(-1)
    return jax.vmap(one)(x.astype(jnp.float32))


if __name__ == "__main__":
    key = jax.random.PRNGKey(0)
    k1, k2 = jax.random.split(key)

    # Case 1: small batch (bb == B, single grid step), default bf16 path.
    B1, T1, N1 = 2, 8, 16
    x1 = jax.random.normal(k1, (B1, T1, N1), dtype=jnp.float32)
    out1 = jax.block_until_ready(prior_correlation(x1))
    ref1 = _reference(x1)
    assert out1.shape == (B1, N1 * N1), out1.shape
    # bf16 input + bf16 Gram operands (f32 accumulation): loose tolerance.
    assert jnp.allclose(out1, ref1, atol=5e-2, rtol=0.0), float(
        jnp.max(jnp.abs(out1 - ref1)))

    # Case 2: B not a multiple of bb -> exercises bb>1, multi-step grid and
    # the zero-padded batch path.
    B2, T2, N2 = 9, 16, 16
    x2 = jax.random.normal(k2, (B2, T2, N2), dtype=jnp.float32)
    out2 = jax.block_until_ready(prior_correlation(x2))
    ref2 = _reference(x2)
    assert out2.shape == (B2, N2 * N2), out2.shape
    assert jnp.allclose(out2, ref2, atol=5e-2, rtol=0.0), float(
        jnp.max(jnp.abs(out2 - ref2)))

    # Case 3: full-f32 path for a tight semantic check vs. torch.corrcoef.
    out3 = jax.block_until_ready(prior_correlation(x2, use_bf16=False))
    assert jnp.allclose(out3, ref2, atol=1e-3, rtol=0.0), float(
        jnp.max(jnp.abs(out3 - ref2)))

    print("KERNEL_OK")
</pallas_src>

<mosaic_0001>
module attributes {stable_mosaic.version = 11 : i64} {
  func.func @_corr_block_kernel(%arg0: i32, %arg1: memref<2x8x16xbf16, #tpu.memory_space<vmem>>, %arg2: memref<2x16x16xf32, #tpu.memory_space<vmem>>) attributes {dimension_semantics = [#tpu.dimension_semantics<parallel>], iteration_bounds = array<i64: 1>, scalar_prefetch = 0 : i64, scratch_operands = 0 : i64, tpu.core_type = #tpu.core_type<tc>, window_params = [{transform_indices = @transform_0, window_bounds = array<i64: 2, 8, 16>}, {transform_indices = @transform_1, window_bounds = array<i64: 2, 16, 16>}]} {
    %0 = tpu.iota {dimensions = array<i32: 0>} : vector<16x16xi32>
    %1 = tpu.iota {dimensions = array<i32: 1>} : vector<16x16xi32>
    %2 = arith.cmpi eq, %0, %1 : vector<16x16xi32>
    %cst = arith.constant 1.000000e+00 : f32
    %cst_0 = arith.constant 0.000000e+00 : f32
    %c0_i32 = arith.constant 0 : i32
    %c2_i32 = arith.constant 2 : i32
    %3 = arith.addi %c0_i32, %c2_i32 : i32
    %c1_i32 = arith.constant 1 : i32
    scf.for %arg3 = %c0_i32 to %3 step %c1_i32  : i32 {
      %4 = arith.index_cast %arg3 : i32 to index
      %c0 = arith.constant 0 : index
      %c0_2 = arith.constant 0 : index
      %5 = vector.load %arg1[%4, %c0, %c0_2] : memref<2x8x16xbf16, #tpu.memory_space<vmem>>, vector<1x8x16xbf16>
      %6 = vector.shape_cast %5 : vector<1x8x16xbf16> to vector<8x16xbf16>
      %7 = arith.extf %6 : vector<8x16xbf16> to vector<8x16xf32>
      %cst_3 = arith.constant dense<0.000000e+00> : vector<16xf32>
      %8 = vector.multi_reduction <add>, %7, %cst_3 [0] : vector<8x16xf32> to vector<16xf32>
      %9 = vector.shape_cast %8 : vector<16xf32> to vector<1x16xf32>
      %cst_4 = arith.constant 8.000000e+00 : f32
      %10 = vector.broadcast %cst_4 : f32 to vector<1x16xf32>
      %11 = arith.divf %9, %10 : vector<1x16xf32>
      %12 = vector.broadcast %11 : vector<1x16xf32> to vector<8x16xf32>
      %13 = arith.subf %7, %12 : vector<8x16xf32>
      %14 = arith.mulf %13, %13 : vector<8x16xf32>
      %cst_5 = arith.constant dense<0.000000e+00> : vector<16xf32>
      %15 = vector.multi_reduction <add>, %14, %cst_5 [0] : vector<8x16xf32> to vector<16xf32>
      %16 = arith.truncf %13 : vector<8x16xf32> to vector<8x16xbf16>
      %cst_6 = arith.constant dense<0.000000e+00> : vector<16x16xf32>
      %17 = tpu.matmul %16, %16, %cst_6 {dimension_numbers = #tpu.dot_dimension_numbers<[0], [0], [1], [1], [0, 1, 1, 1], [], []>} : vector<8x16xbf16>, vector<8x16xbf16>, vector<16x16xf32> -> vector<16x16xf32>
      %18 = math.rsqrt %15 : vector<16xf32>
      %19 = vector.shape_cast %18 : vector<16xf32> to vector<16x1xf32>
      %20 = vector.broadcast %19 : vector<16x1xf32> to vector<16x16xf32>
      %21 = arith.mulf %17, %20 : vector<16x16xf32>
      %22 = vector.shape_cast %18 : vector<16xf32> to vector<1x16xf32>
      %23 = vector.broadcast %22 : vector<1x16xf32> to vector<16x16xf32>
      %24 = arith.mulf %21, %23 : vector<16x16xf32>
      %cst_7 = arith.constant -1.000000e+00 : f32
      %cst_8 = arith.constant 1.000000e+00 : f32
      %25 = vector.broadcast %cst_7 : f32 to vector<16x16xf32>
      %26 = arith.maximumf %25, %24 : vector<16x16xf32>
      %27 = vector.broadcast %cst_8 : f32 to vector<16x16xf32>
      %28 = arith.minimumf %27, %26 : vector<16x16xf32>
      %29 = vector.broadcast %cst : f32 to vector<16x16xf32>
      %30 = arith.select %2, %29, %28 : vector<16x16xi1>, vector<16x16xf32>
      %31 = math.absf %30 : vector<16x16xf32>
      %32 = arith.cmpf one, %31, %31 : vector<16x16xf32>
      %33 = vector.broadcast %cst_0 : f32 to vector<16x16xf32>
      %34 = arith.select %32, %33, %31 : vector<16x16xi1>, vector<16x16xf32>
      %35 = arith.index_cast %arg3 : i32 to index
      %c0_9 = arith.constant 0 : index
      %c0_10 = arith.constant 0 : index
      %36 = vector.load %arg2[%35, %c0_9, %c0_10] : memref<2x16x16xf32, #tpu.memory_space<vmem>>, vector<1x16x16xf32>
      %37 = vector.shape_cast %36 : vector<1x16x16xf32> to vector<16x16xf32>
      %38 = vector.shape_cast %34 : vector<16x16xf32> to vector<1x16x16xf32>
      tpu.vector_store %arg2[%35, %c0_9, %c0_10], %38 {strides = array<i32>} : memref<2x16x16xf32, #tpu.memory_space<vmem>>, vector<1x16x16xf32>,
    }
    %c2_i32_1 = arith.constant 2 : i32
    return
  }
  func.func @transform_0(%arg0: i32) -> (i32, i32, i32) {
    %c0_i32 = arith.constant 0 : i32
    %c0_i32_0 = arith.constant 0 : i32
    %c0_i32_1 = arith.constant 0 : i32
    return %arg0, %c0_i32, %c0_i32_0 : i32, i32, i32
  }
  func.func @transform_1(%arg0: i32) -> (i32, i32, i32) {
    %c0_i32 = arith.constant 0 : i32
    %c0_i32_0 = arith.constant 0 : i32
    %c0_i32_1 = arith.constant 0 : i32
    return %arg0, %c0_i32, %c0_i32_0 : i32, i32, i32
  }
}

</mosaic_0001>

<bundles_post_ra>
// kernel: tpu_custom_call.1
= control target key start
LH: loop header
LB: loop body
LE: loop exit
PB: predicated region body
PF: predicated region fallthrough
CT: control target
= control target key end

     0   :  { %6 = vsyncpa [#allocation3], 0  ;;  %s341_s0 = inlined_call_operand.hbm [shape: bf16[2,8,16], index: 0, kind: input, shape index: {}]   ;;  %s342_s1 = inlined_call_operand.hbm [shape: f32[2,16,16], index: 1, kind: output, shape index: {}]  }
   0x1   :  { %7 = vsyncpa [#allocation4], 0  ;;  %s268_s6 = smov [#allocation2]   ;;  %s212_s10 = scalar_lea.hbm %s341_s0, 128 }
   0x2   :  { %s13_s7 = sshll.u32 %s268_s6, 4  ;;  %p213_p0 = scmp.ne.s32.totalorder %s341_s0, %s212_s10  ;;  %s14_s7 = int_to_ptr.vmem [resolvable:$true] %s13_s7 }
   0x3   :  { %p216_p1 = scmp.lt.u32.totalorder %s212_s10, %s341_s0 }
   0x5   :  { %p218_p2 = pnand %p216_p1, %p213_p0 }
   0x7   :  { %221 = shalt.err (!%p218_p2)
}
   0x8   :  { %s222_s15 = scalar_lea.vmem %s14_s7, 128  ;;  %p227_p4 = scmp.lt.s32.totalorder %s14_s7, %s14_s7 }
   0x9   :  { %p223_p3 = scmp.ne.s32.totalorder %s14_s7, %s222_s15  ;;  %p228_p5 = scmp.lt.s32.totalorder %s222_s15, %s222_s15 }
   0xb   :  { %p229_p6 = por %p228_p5, %p227_p4 }
   0xd   :  { %p230_p7 = pnand %p229_p6, %p223_p3 }
   0xf   :  { %233 = shalt.err (!%p230_p7)
}
  0x10   :  { %s269_s16 = smov 64   ;;  %s270_s17 = smov 4  }
  0x11   :  { %19 = dma.hbm_to_vmem [thread:$0]  %s341_s0, 128, %s14_s7, [#allocation3], %s269_s16, %s269_s16, %s270_s17  }
  0x12   :  { %260 = dma.done.wait [#allocation3], 128  }
  0x13   :  { %261 = vsyncadd [#allocation3], 4294967168  ;;  %v24_v0 = vlaneseq  ;;  %s309_s20 = smov 0  }
  0x15   :  { %v298_v1 = vshrl.u32 %v24_v0, 7  ;;  %v300_v2 = vand.u32 127, %v24_v0 }
  0x17   :  { %v303_v3 = vadd.s32 8, %v298_v1  ;;  %vm29_vm0 = vcmp.eq.s32.totalorder %v298_v1, %v300_v2 }
  0x19   :  { %vm30_vm1 = vcmp.eq.s32.totalorder %v303_v3, %v300_v2 }
  0x1a LB: > { %v271_v4 = vmov 0.0   ;;  %s180_s0 = sshll.u32 %s266_s20, 2  ;;  %vm272_vm2 = vmmov 0   ;;  %vm41_vm3 = vcmask 130048   ;;  %vm81_vm4 = vcmask 1043456   ;;  %s184_s22 = sshll.u32 %s266_s20, 4  ;;  %s266_s20 = sphi %s309_s20, %s36_s20  }
  0x1b   : > { %187 = vmatprep.subr.bf16.mxu0 %v271_v4  ;;  %189 = vmatprep.mubr.msk.bf16.mxu0 %vm272_vm2, %v271_v4  ;;  %s38_s21 = scalar_lea.vmem [#allocation2], %s180_s0  ;;  %vm77_vm5 = vcmask 64512   ;;  %s151_s23 = scalar_lea.vmem [#allocation5], %s184_s22 }
  0x1c   : > { %v39_v5 = vld [vmem:[%s38_s21] sm:$0xf]  ;;  %s36_s20 = sadd.s32 1, %s266_s20  }
  0x1d   : > { %v40_v6 = vunpack.c.l.bf16 %v39_v5  ;;  %p33_p8 = scmp.ge.s32.totalorder %s36_s20, 2  }
  0x1e   :  { %s273_s24 = smov (%p33_p8), [#allocation5]  }
  0x1f   : > { %v42_v7 = vsel %vm41_vm3, %v40_v6, 0.0  ;;  %s159_s25 = sshll.u32 (%p33_p8), %s273_s24, 4  ;;  %s160_s25 = int_to_ptr.vmem [resolvable:$true] %s159_s25 }
  0x20   : > { %v43_v8 = vrot.slane %v42_v7, 4  ;;  %s234_s26 = scalar_lea.vmem (%p33_p8), %s160_s25, 512  ;;  %p239_p10 = scmp.lt.s32.totalorder (%p33_p8), %s160_s25, %s160_s25 }
  0x21   :  { %p235_p9 = scmp.ne.s32.totalorder (%p33_p8), %s160_s25, %s234_s26  ;;  %p240_p11 = scmp.lt.s32.totalorder (%p33_p8), %s234_s26, %s234_s26 }
  0x22   : > { %v44_v9 = vadd.f32 %v43_v8, %v42_v7 }
  0x23   :  { %p241_p12 = por (%p33_p8), %p240_p11, %p239_p10 }
  0x24   : > { %v45_v10 = vrot.slane %v44_v9, 2 }
  0x25   :  { %p242_p13 = pnand (%p33_p8), %p241_p12, %p235_p9 }
  0x26   : > { %v46_v11 = vadd.f32 %v45_v10, %v44_v9 }
  0x28   : > { %v47_v12 = vrot.slane %v46_v11, 1 }
  0x2a   : > { %v48_v13 = vadd.f32 %v47_v12, %v46_v11 }
  0x2c   : > { %v50_v14 = vmul.f32 0.125, %v48_v13 }
  0x2e   : > { %v51_v15 = vsub.f32 %v40_v6, %v50_v14 }
  0x30   : > { %v60_v16 = vpack.c.bf16 %v51_v15, %v51_v15  ;;  %v52_v17 = vmul.f32 %v51_v15, %v51_v15 }
  0x32   : > { %61 = vxpose.xlu0.c.b16.start.end [1/1] (short) (narrow) %v60_v16, 16  ;;  %v53_v18 = vsel %vm41_vm3, %v52_v17, 0.0  ;;  %v83_v19 = vsel %vm81_vm4, %v60_v16, 0 }
  0x33   : > { %v54_v20 = vrot.slane %v53_v18, 4  ;;  %188 = vmatpush3.bf16.msra.mxu0 %v83_v19 }
  0x35   : > { %v55_v21 = vadd.f32 %v54_v20, %v53_v18 }
  0x37   : > { %v56_v22 = vrot.slane %v55_v21, 2 }
  0x39   : > { %v57_v23 = vadd.f32 %v56_v22, %v55_v21 }
  0x3b   : > { %v58_v24 = vrot.slane %v57_v23, 1 }
  0x3d   : > { %v59_v25 = vadd.f32 %v58_v24, %v57_v23 }
  0x3f   : > { %210 = vrsqrt.f32 %v59_v25 }
  0x49   : > { %v211_v26 = vpop.eup %210 }
  0x4a   : > { %128 = vbcast.lane.b32.xlu0 %v211_v26, 256  ;;  %132 = vbcast.lane.b32.xlu1 %v211_v26, 264 }
  0x98   : > { %v69_v27 = vpop.trf.xlu0 }
  0x99   : > { %190 = vmatmul.mubr.msk.bf16.vlgmr.msra.gmra.mrb[0].mxu0 %vm77_vm5, %v69_v27 }
  0xbc   : > { %v129_v28 = vpop.permute.xlu0 %128  ;;  %v133_v30 = vpop.permute.xlu1 %132 }
 0x16c   : > { %v119_v29 = vpop.f32.mrb[0].mxu0 }
 0x16d   : > { %v134_v31 = vmul.f32 %v129_v28, %v119_v29  ;;  %v191_v32 = vpop.f32.mrb[1].mxu0 }
 0x16e   : > { %v122_v33 = vpop.f32.mrb[2].mxu0 }
 0x16f   : > { %v136_v34 = vmul.f32 %v211_v26, %v134_v31  ;;  %v135_v35 = vmul.f32 %v133_v30, %v122_v33  ;;  %v192_v36 = vpop.f32.mrb[3].mxu0 }
 0x171   : > { %v182_v37 = vclamps-f32 %v136_v34, 1.0  ;;  %v137_v38 = vmul.f32 %v211_v26, %v135_v35 }
 0x173   : > { %v142_v39 = vsel %vm29_vm0, 1.0, %v182_v37  ;;  %v183_v40 = vclamps-f32 %v137_v38, 1.0 }
 0x174   : > { %v144_v41 = vand.u32 2147483647, %v142_v39  ;;  %35 = sbr.rel (!%p33_p8) target bundleno = 26 (0x1a), region = 37 }
 0x175   : > { %v143_v42 = vsel %vm30_vm1, 1.0, %v183_v40 }
 0x176   : > { %vm146_vm6 = vcmp.ne.f32.partialorder %v144_v41, %v144_v41  ;;  %v145_v43 = vand.u32 2147483647, %v143_v42 }
 0x177   : > { %v148_v44 = vsel %vm146_vm6, 0.0, %v144_v41 }
 0x178   : > { %152 = vst.msk [vmem:[%s151_s23] sm:$0xff] %vm41_vm3, %v148_v44  ;;  %vm147_vm7 = vcmp.ne.f32.partialorder %v145_v43, %v145_v43 }
 0x179   : > { %v149_v45 = vsel %vm147_vm7, 0.0, %v145_v43 }
 0x17a   : > { %153 = vst.msk [vmem:[%s151_s23 + $0x8] sm:$0xff] %vm41_vm3, %v149_v45 }
 0x17b   :  { %245 = shalt.err (!%p242_p13)
}
 0x17c   :  { %s246_s29 = scalar_lea.hbm %s342_s1, 512 }
 0x17d   :  { %p247_p0 = scmp.ne.s32.totalorder %s342_s1, %s246_s29  ;;  %p250_p1 = scmp.lt.u32.totalorder %s246_s29, %s342_s1 }
 0x17f   :  { %p252_p2 = pnand %p250_p1, %p247_p0 }
 0x181   :  { %255 = shalt.err (!%p252_p2)
}
 0x182   :  { %s274_s5 = smov 128   ;;  %s275_s6 = smov 8  }
 0x183   :  { %165 = dma.vmem_to_hbm [thread:$0]  %s160_s25, 512, %s342_s1, [#allocation4], %s274_s5, %s274_s5, %s275_s6  }
 0x184   :  { %262 = dma.done.wait [#allocation4], 512  }
 0x185   :  { %263 = vsyncadd [#allocation4], 4294966784 }
 0x186   :  { %169 = vsyncpa [#allocation3], 1 }
 0x187   :  { %170 = vsyncpa [#allocation4], 1 }

</bundles_post_ra>
